<compile_context>
chip_gen: v7x
topology: tpu7x:2x2x1
jax: 0.10.0
libtpu: 0.0.40
codegen_flags: <defaults>
</compile_context>

<pallas_src>
import math
from functools import partial

import jax
import jax.numpy as jnp
from jax.experimental import pallas as pl
from jax.experimental.pallas import tpu as pltpu


def layernorm_kernel(x_ref, gamma_ref, beta_ref, m_ref, o_ref, *, eps, d, g):
    """One (tm, G*D) tile of packed rows.

    x_ref     : (tm, G*D) input tile (input dtype)
    gamma_ref : (1, G*D)  f32, resident
    beta_ref  : (1, G*D)  f32, resident
    m_ref     : (G*D, G)  f32 0/1 group-membership matrix, resident
    o_ref     : (tm, G*D) output tile
    """
    x = x_ref[...].astype(jnp.float32)            # (tm, G*D)
    inv_d = 1.0 / float(d)

    if g == 1:
        # D is already the full lane extent: plain cross-lane reductions,
        # (tm, 1) stats broadcast natively along lanes.
        s1 = jnp.sum(x, axis=-1, keepdims=True)
        s2 = jnp.sum(x * x, axis=-1, keepdims=True)
        mean = s1 * inv_d
        var = jnp.maximum(s2 * inv_d - mean * mean, 0.0)
        inv = jax.lax.rsqrt(var + eps)
        mean_full = mean
        inv_full = inv
    else:
        # Grouped rows packed along lanes: per-group sums via tiny 0/1 matmuls
        # (MXU is idle in this memory-bound kernel, so this is free and keeps
        # every vector op full-lane-width).
        m = m_ref[...]                                             # (G*D, G)
        s1 = jnp.dot(x, m, preferred_element_type=jnp.float32)     # (tm, G)
        s2 = jnp.dot(x * x, m, preferred_element_type=jnp.float32) # (tm, G)
        mean = s1 * inv_d
        var = jnp.maximum(s2 * inv_d - mean * mean, 0.0)
        inv = jax.lax.rsqrt(var + eps)
        # Broadcast per-group stats back to (tm, G*D) by multiplying with M^T.
        dn = (((1,), (1,)), ((), ()))
        mean_full = jax.lax.dot_general(mean, m, dn,
                                        preferred_element_type=jnp.float32)
        inv_full = jax.lax.dot_general(inv, m, dn,
                                       preferred_element_type=jnp.float32)

    y = (x - mean_full) * inv_full * gamma_ref[...] + beta_ref[...]
    o_ref[...] = y.astype(o_ref.dtype)


def layer_norm(x, gamma, beta, eps=1e-5):
    """LayerNorm over the last axis (torch var unbiased=False semantics).

    x: (..., D); gamma/beta: broadcastable to (1, 1, D) / (D,).
    """
    orig_shape = x.shape
    D = orig_shape[-1]
    rows = math.prod(orig_shape[:-1]) if len(orig_shape) > 1 else 1
    x2 = x.reshape(rows, D)

    g32 = jnp.asarray(gamma, jnp.float32).reshape(1, D)
    b32 = jnp.asarray(beta, jnp.float32).reshape(1, D)

    # Lane-dense packing: if D < 128 and divides 128, pack G rows per
    # 128-lane packed row (free contiguous reshape in the wrapper).
    if D < 128 and 128 % D == 0 and rows % (128 // D) == 0:
        G = 128 // D
    else:
        G = 1
    Dp = G * D
    Rg = rows // G
    x2 = x2.reshape(Rg, Dp)
    gp = jnp.tile(g32, (1, G))
    bp = jnp.tile(b32, (1, G))

    # Group-membership matrix M[i, g] = 1 iff lane i belongs to group g.
    m = (jnp.arange(Dp, dtype=jnp.int32)[:, None] // D
         == jnp.arange(G, dtype=jnp.int32)[None, :]).astype(jnp.float32)

    itemsize = x2.dtype.itemsize
    sub = 16 if itemsize <= 2 else 8          # sublane packing granularity
    # Biggest row tile that keeps double-buffered (in + out) tiles ~<= 12 MiB,
    # capped at 1024 rows (fits v7x's smaller VMEM with headroom).
    budget = 12 * 1024 * 1024
    tm = budget // (4 * Dp * itemsize)
    tm = max(sub, min(1024, (tm // sub) * sub))
    rg_aligned = ((Rg + sub - 1) // sub) * sub
    tm = min(tm, rg_aligned)

    # Pad rows to a multiple of the tile instead of asserting divisibility.
    Rp = ((Rg + tm - 1) // tm) * tm
    if Rp != Rg:
        x2 = jnp.pad(x2, ((0, Rp - Rg), (0, 0)))

    kernel = partial(layernorm_kernel, eps=eps, d=D, g=G)
    out = pl.pallas_call(
        kernel,
        out_shape=jax.ShapeDtypeStruct((Rp, Dp), x.dtype),
        grid_spec=pltpu.PrefetchScalarGridSpec(
            num_scalar_prefetch=0,
            grid=(Rp // tm,),
            in_specs=[
                pl.BlockSpec((tm, Dp), lambda i: (i, 0)),
                pl.BlockSpec((1, Dp), lambda i: (0, 0)),
                pl.BlockSpec((1, Dp), lambda i: (0, 0)),
                pl.BlockSpec((Dp, G), lambda i: (0, 0)),
            ],
            out_specs=pl.BlockSpec((tm, Dp), lambda i: (i, 0)),
        ),
        compiler_params=pltpu.CompilerParams(
            dimension_semantics=("parallel",),
            vmem_limit_bytes=32 * 1024 * 1024,
        ),
    )(x2, gp, bp, m)

    return out[:Rg].reshape(rows, D).reshape(orig_shape)


def einops_to_and_from_nchw(x, fn):
    """EinopsToAndFrom('b c h w', 'b (h w) c', fn): rearrange, apply fn,
    rearrange back.  The rearranges are pure layout plumbing (transpose /
    reshape in the wrapper)."""
    B, C, H, W = x.shape
    xr = jnp.transpose(x, (0, 2, 3, 1)).reshape(B, H * W, C)   # b c h w -> b (h w) c
    yr = fn(xr)
    return jnp.transpose(yr.reshape(B, H, W, C), (0, 3, 1, 2))  # back to b c h w


if __name__ == "__main__":
    key = jax.random.PRNGKey(0)
    k1, k2 = jax.random.split(key)

    # EinopsToAndFrom('b c h w', 'b (h w) c', LayerNorm(dim=C)) demo (D < 128
    # exercises the lane-packed path, G = 4).
    B, C, H, W = 2, 32, 4, 4
    x = jax.random.normal(k1, (B, C, H, W), dtype=jnp.float32)
    gamma = jnp.ones((1, 1, C), dtype=jnp.float32)   # nn.Parameter(torch.ones(1,1,dim))
    beta = jnp.zeros((1, 1, C), dtype=jnp.float32)   # nn.Parameter(torch.zeros(1,1,dim))

    y = einops_to_and_from_nchw(x, lambda t: layer_norm(t, gamma, beta, eps=1e-5))
    y = jax.block_until_ready(y)

    # Reference in plain JAX (same rearrange round-trip + two-pass LayerNorm).
    xr = jnp.transpose(x, (0, 2, 3, 1))
    mean = jnp.mean(xr, axis=-1, keepdims=True)
    var = jnp.mean((xr - mean) ** 2, axis=-1, keepdims=True)
    yr = (xr - mean) / jnp.sqrt(var + 1e-5) * gamma.reshape(1, 1, 1, C) \
        + beta.reshape(1, 1, 1, C)
    y_ref = jnp.transpose(yr, (0, 3, 1, 2))
    assert jnp.allclose(y, y_ref, atol=1e-4, rtol=1e-4), "NCHW path mismatch"

    # Also exercise the D >= 128 (no packing, G = 1) path directly.
    S, D = 8, 128
    x2 = jax.random.normal(k2, (B, S, D), dtype=jnp.float32)
    g2 = jnp.ones((1, 1, D), dtype=jnp.float32)
    b2 = jnp.zeros((1, 1, D), dtype=jnp.float32)
    y2 = jax.block_until_ready(layer_norm(x2, g2, b2, eps=1e-5))
    mean2 = jnp.mean(x2, axis=-1, keepdims=True)
    var2 = jnp.mean((x2 - mean2) ** 2, axis=-1, keepdims=True)
    y2_ref = (x2 - mean2) / jnp.sqrt(var2 + 1e-5) * g2 + b2
    assert jnp.allclose(y2, y2_ref, atol=1e-4, rtol=1e-4), "wide-D path mismatch"

    print("KERNEL_OK")
</pallas_src>

<mosaic_0001>
module attributes {stable_mosaic.version = 11 : i64} {
  func.func @layernorm_kernel(%arg0: i32, %arg1: memref<8x128xf32, #tpu.memory_space<vmem>>, %arg2: memref<1x128xf32, #tpu.memory_space<vmem>>, %arg3: memref<1x128xf32, #tpu.memory_space<vmem>>, %arg4: memref<128x4xf32, #tpu.memory_space<vmem>>, %arg5: memref<8x128xf32, #tpu.memory_space<vmem>>) attributes {dimension_semantics = [#tpu.dimension_semantics<parallel>], iteration_bounds = array<i64: 1>, scalar_prefetch = 0 : i64, scratch_operands = 0 : i64, tpu.core_type = #tpu.core_type<tc>, window_params = [{transform_indices = @transform_0, window_bounds = array<i64: 8, 128>}, {pipeline_mode = #tpu.pipeline_mode<synchronous>, transform_indices = @transform_1, window_bounds = array<i64: 1, 128>}, {pipeline_mode = #tpu.pipeline_mode<synchronous>, transform_indices = @transform_2, window_bounds = array<i64: 1, 128>}, {pipeline_mode = #tpu.pipeline_mode<synchronous>, transform_indices = @transform_3, window_bounds = array<i64: 128, 4>}, {transform_indices = @transform_4, window_bounds = array<i64: 8, 128>}]} {
    %c0 = arith.constant 0 : index
    %c0_0 = arith.constant 0 : index
    %0 = vector.load %arg1[%c0, %c0_0] : memref<8x128xf32, #tpu.memory_space<vmem>>, vector<8x128xf32>
    %c0_1 = arith.constant 0 : index
    %c0_2 = arith.constant 0 : index
    %1 = vector.load %arg4[%c0_1, %c0_2] : memref<128x4xf32, #tpu.memory_space<vmem>>, vector<128x4xf32>
    %cst = arith.constant dense<0.000000e+00> : vector<8x4xf32>
    %2 = tpu.matmul %0, %1, %cst {dimension_numbers = #tpu.dot_dimension_numbers<[1], [0], [0], [1], [0, 0, 1, 1], [], []>} : vector<8x128xf32>, vector<128x4xf32>, vector<8x4xf32> -> vector<8x4xf32>
    %3 = arith.mulf %0, %0 : vector<8x128xf32>
    %cst_3 = arith.constant dense<0.000000e+00> : vector<8x4xf32>
    %4 = tpu.matmul %3, %1, %cst_3 {dimension_numbers = #tpu.dot_dimension_numbers<[1], [0], [0], [1], [0, 0, 1, 1], [], []>} : vector<8x128xf32>, vector<128x4xf32>, vector<8x4xf32> -> vector<8x4xf32>
    %cst_4 = arith.constant 3.125000e-02 : f32
    %5 = vector.broadcast %cst_4 : f32 to vector<8x4xf32>
    %6 = arith.mulf %2, %5 : vector<8x4xf32>
    %cst_5 = arith.constant 3.125000e-02 : f32
    %7 = vector.broadcast %cst_5 : f32 to vector<8x4xf32>
    %8 = arith.mulf %4, %7 : vector<8x4xf32>
    %9 = arith.mulf %6, %6 : vector<8x4xf32>
    %10 = arith.subf %8, %9 : vector<8x4xf32>
    %cst_6 = arith.constant 0.000000e+00 : f32
    %11 = vector.broadcast %cst_6 : f32 to vector<8x4xf32>
    %12 = arith.maximumf %10, %11 : vector<8x4xf32>
    %cst_7 = arith.constant 9.99999974E-6 : f32
    %13 = vector.broadcast %cst_7 : f32 to vector<8x4xf32>
    %14 = arith.addf %12, %13 : vector<8x4xf32>
    %15 = math.rsqrt %14 : vector<8x4xf32>
    %cst_8 = arith.constant dense<0.000000e+00> : vector<8x128xf32>
    %16 = tpu.matmul %6, %1, %cst_8 {dimension_numbers = #tpu.dot_dimension_numbers<[1], [1], [0], [0], [0, 0, 1, 0], [], []>} : vector<8x4xf32>, vector<128x4xf32>, vector<8x128xf32> -> vector<8x128xf32>
    %cst_9 = arith.constant dense<0.000000e+00> : vector<8x128xf32>
    %17 = tpu.matmul %15, %1, %cst_9 {dimension_numbers = #tpu.dot_dimension_numbers<[1], [1], [0], [0], [0, 0, 1, 0], [], []>} : vector<8x4xf32>, vector<128x4xf32>, vector<8x128xf32> -> vector<8x128xf32>
    %18 = arith.subf %0, %16 : vector<8x128xf32>
    %19 = arith.mulf %18, %17 : vector<8x128xf32>
    %c0_10 = arith.constant 0 : index
    %c0_11 = arith.constant 0 : index
    %20 = vector.load %arg2[%c0_10, %c0_11] : memref<1x128xf32, #tpu.memory_space<vmem>>, vector<1x128xf32>
    %21 = vector.broadcast %20 : vector<1x128xf32> to vector<8x128xf32>
    %22 = arith.mulf %19, %21 : vector<8x128xf32>
    %c0_12 = arith.constant 0 : index
    %c0_13 = arith.constant 0 : index
    %23 = vector.load %arg3[%c0_12, %c0_13] : memref<1x128xf32, #tpu.memory_space<vmem>>, vector<1x128xf32>
    %24 = vector.broadcast %23 : vector<1x128xf32> to vector<8x128xf32>
    %25 = arith.addf %22, %24 : vector<8x128xf32>
    %c0_14 = arith.constant 0 : index
    %c0_15 = arith.constant 0 : index
    %26 = vector.load %arg5[%c0_14, %c0_15] : memref<8x128xf32, #tpu.memory_space<vmem>>, vector<8x128xf32>
    tpu.vector_store %arg5[%c0_14, %c0_15], %25 {strides = array<i32>} : memref<8x128xf32, #tpu.memory_space<vmem>>, vector<8x128xf32>,
    return
  }
  func.func @transform_0(%arg0: i32) -> (i32, i32) {
    %c0_i32 = arith.constant 0 : i32
    %c0_i32_0 = arith.constant 0 : i32
    return %arg0, %c0_i32 : i32, i32
  }
  func.func @transform_1(%arg0: i32) -> (i32, i32) {
    %c0_i32 = arith.constant 0 : i32
    %c0_i32_0 = arith.constant 0 : i32
    %c0_i32_1 = arith.constant 0 : i32
    return %c0_i32, %c0_i32_0 : i32, i32
  }
  func.func @transform_2(%arg0: i32) -> (i32, i32) {
    %c0_i32 = arith.constant 0 : i32
    %c0_i32_0 = arith.constant 0 : i32
    %c0_i32_1 = arith.constant 0 : i32
    return %c0_i32, %c0_i32_0 : i32, i32
  }
  func.func @transform_3(%arg0: i32) -> (i32, i32) {
    %c0_i32 = arith.constant 0 : i32
    %c0_i32_0 = arith.constant 0 : i32
    %c0_i32_1 = arith.constant 0 : i32
    return %c0_i32, %c0_i32_0 : i32, i32
  }
  func.func @transform_4(%arg0: i32) -> (i32, i32) {
    %c0_i32 = arith.constant 0 : i32
    %c0_i32_0 = arith.constant 0 : i32
    return %arg0, %c0_i32 : i32, i32
  }
}

</mosaic_0001>

<bundles_post_ra>
// kernel: tpu_custom_call.1
= control target key start
LH: loop header
LB: loop body
LE: loop exit
PB: predicated region body
PF: predicated region fallthrough
CT: control target
= control target key end

     0   :  { %v797_v3 = vmov 0.0|0.0   ;;  %vm798_vm0 = vmmov 0   ;;  %v799_v6 = vmov 0.0   ;;  %s989_s0 = inlined_call_operand.vmem [shape: f32[8,128], index: 0, kind: input, shape index: {}]   ;;  %s990_s1 = inlined_call_operand.vmem [shape: f32[1,128], index: 1, kind: input, shape index: {}]   ;;  %s991_s2 = inlined_call_operand.vmem [shape: f32[1,128], index: 2, kind: input, shape index: {}]   ;;  %s992_s3 = inlined_call_operand.vmem [shape: f32[128,4], index: 3, kind: input, shape index: {}]   ;;  %s993_s4 = inlined_call_operand.hbm [shape: f32[8,128], index: 4, kind: output, shape index: {}]  }
   0x1   :  { %v19_v0 = vld [vmem:[%s992_s3] sm:$0xff]  ;;  %v20_v1 = vld [vmem:[%s992_s3 + $0x8] sm:$0xff]  ;;  %v21_v2 = vld [vmem:[%s992_s3 + $0x10] sm:$0xff]  ;;  %655 = vmatprep.subr.bf16.mxu0 %v797_v3  ;;  %679 = vmatprep.subr.bf16.mxu1 %v797_v3 }
   0x2   :  { %v836_v4 = vpack.c.bf16 %v20_v1, %v19_v0  ;;  %v22_v5 = vld [vmem:[%s992_s3 + $0x18] sm:$0xff]  ;;  %547 = vmatprep.mubr.msk.f32.mxu0 %vm798_vm0, %v799_v6  ;;  %582 = vmatprep.mubr.msk.f32.mxu1 %vm798_vm0, %v799_v6  ;;  %v23_v8 = vld [vmem:[%s992_s3 + $0x20] sm:$0xff]  ;;  %v24_v9 = vld [vmem:[%s992_s3 + $0x28] sm:$0xff] }
   0x3   :  { %v846_v7 = vpack.c.bf16 %v22_v5, %v21_v2 }
   0x4   :  { %657 = vmatpush3.bf16.msra.mxu0 %v836_v4  ;;  %681 = vmatpush3.bf16.msra.mxu1 %v836_v4 }
   0x5   :  { %658 = vmatprep.subr.bf16.mxu0 %v797_v3  ;;  %682 = vmatprep.subr.bf16.mxu1 %v797_v3 }
   0x6   :  { %9 = vsyncpa [#allocation3], 0  ;;  %v662_v10 = vpack.c.bf16 %v24_v9, %v23_v8  ;;  %v25_v11 = vld [vmem:[%s992_s3 + $0x30] sm:$0xff]  ;;  %v26_v12 = vld [vmem:[%s992_s3 + $0x38] sm:$0xff]  ;;  %vm183_vm1 = vcmask 31744   ;;  %s800_s25 = smov [#allocation2]  }
   0x7   :  { %v665_v13 = vpack.c.bf16 %v26_v12, %v25_v11  ;;  %v27_v14 = vld [vmem:[%s992_s3 + $0x40] sm:$0xff]  ;;  %v28_v15 = vld [vmem:[%s992_s3 + $0x48] sm:$0xff]  ;;  %v29_v17 = vld [vmem:[%s992_s3 + $0x50] sm:$0xff]  ;;  %s403_s26 = sshll.u32 %s800_s25, 4  ;;  %s404_s26 = int_to_ptr.vmem [resolvable:$true] %s403_s26 }
   0x8   :  { %660 = vmatpush3.bf16.msra.mxu0 %v846_v7  ;;  %684 = vmatpush3.bf16.msra.mxu1 %v846_v7  ;;  %v668_v16 = vpack.c.bf16 %v28_v15, %v27_v14  ;;  %v30_v18 = vld [vmem:[%s992_s3 + $0x58] sm:$0xff]  ;;  %v31_v20 = vld [vmem:[%s992_s3 + $0x60] sm:$0xff]  ;;  %v32_v21 = vld [vmem:[%s992_s3 + $0x68] sm:$0xff]  ;;  %s773_s27 = scalar_lea.vmem %s404_s26, 128  ;;  %p778_p1 = scmp.lt.s32.totalorder %s404_s26, %s404_s26 }
   0x9   :  { %661 = vmatprep.subr.bf16.mxu0 %v797_v3  ;;  %685 = vmatprep.subr.bf16.mxu1 %v797_v3  ;;  %v671_v19 = vpack.c.bf16 %v30_v18, %v29_v17  ;;  %v674_v22 = vpack.c.bf16 %v32_v21, %v31_v20  ;;  %v33_v23 = vld [vmem:[%s992_s3 + $0x70] sm:$0xff]  ;;  %v34_v24 = vld [vmem:[%s992_s3 + $0x78] sm:$0xff]  ;;  %v901_v26 = vld [vmem:[%s989_s0] sm:$0xff]  ;;  %p774_p0 = scmp.ne.s32.totalorder %s404_s26, %s773_s27  ;;  %p779_p2 = scmp.lt.s32.totalorder %s773_s27, %s773_s27 }
   0xa   :  { %v677_v25 = vpack.c.bf16 %v34_v24, %v33_v23  ;;  %v105_v27 = vmul.f32 %v901_v26, %v901_v26  ;;  %vm914_vm2 = vmpackc.low %vm183_vm1, %vm183_vm1  ;;  %v445_v44 = vld [vmem:[%s990_s1] ss:$0 sm:$0xff] }
   0xb   :  { %v446_v47 = vld [vmem:[%s991_s2] ss:$0 sm:$0xff]  ;;  %p780_p3 = por %p779_p2, %p778_p1 }
   0xc   :  { %663 = vmatpush3.bf16.msra.mxu0 %v662_v10  ;;  %687 = vmatpush3.bf16.msra.mxu1 %v662_v10 }
   0xd   :  { %664 = vmatprep.subr.bf16.mxu0 %v797_v3  ;;  %688 = vmatprep.subr.bf16.mxu1 %v797_v3  ;;  %p781_p4 = pnand %p780_p3, %p774_p0 }
  0x10   :  { %666 = vmatpush3.bf16.msra.mxu0 %v665_v13  ;;  %690 = vmatpush3.bf16.msra.mxu1 %v665_v13 }
  0x11   :  { %667 = vmatprep.subr.bf16.mxu0 %v797_v3  ;;  %691 = vmatprep.subr.bf16.mxu1 %v797_v3 }
  0x14   :  { %669 = vmatpush3.bf16.msra.mxu0 %v668_v16  ;;  %693 = vmatpush3.bf16.msra.mxu1 %v668_v16 }
  0x15   :  { %670 = vmatprep.subr.bf16.mxu0 %v797_v3  ;;  %694 = vmatprep.subr.bf16.mxu1 %v797_v3 }
  0x18   :  { %672 = vmatpush3.bf16.msra.mxu0 %v671_v19  ;;  %696 = vmatpush3.bf16.msra.mxu1 %v671_v19 }
  0x19   :  { %673 = vmatprep.subr.bf16.mxu0 %v797_v3  ;;  %697 = vmatprep.subr.bf16.mxu1 %v797_v3 }
  0x1c   :  { %675 = vmatpush3.bf16.msra.mxu0 %v674_v22  ;;  %699 = vmatpush3.bf16.msra.mxu1 %v674_v22 }
  0x1d   :  { %676 = vmatprep.subr.bf16.mxu0 %v797_v3  ;;  %700 = vmatprep.subr.bf16.mxu1 %v797_v3 }
  0x20   :  { %678 = vmatpush3.bf16.msra.mxu0 %v677_v25  ;;  %702 = vmatpush3.bf16.msra.mxu1 %v677_v25 }
  0x21   :  { %703 = vmatprep.subr.bf16.mxu0 %v797_v3  ;;  %735 = vmatprep.subr.bf16.mxu1 %v797_v3 }
  0x23   :  { %548 = vmatmul.mubr.f32.vlgmr.msra.gmra.mrb[0].mxu0 %v901_v26  ;;  %583 = vmatmul.mubr.f32.vlgmr.msra.gmra.mrb[0].mxu1 %v105_v27 }
  0x24   :  { %617 = vmatprep.mubr.msk.f32.mxu0 %vm798_vm0, %v799_v6  ;;  %652 = vmatprep.mubr.msk.f32.mxu1 %vm798_vm0, %v799_v6 }
  0x29   :  { %706 = vmatpush3.bf16.xpose.msk.msra.mxu0 %vm914_vm2, %v836_v4  ;;  %738 = vmatpush3.bf16.xpose.msk.msra.mxu1 %vm914_vm2, %v836_v4 }
  0x2a   :  { %707 = vmatprep.subr.bf16.mxu0 %v797_v3  ;;  %739 = vmatprep.subr.bf16.mxu1 %v797_v3 }
  0x31   :  { %710 = vmatpush3.bf16.xpose.msk.msra.mxu0 %vm914_vm2, %v846_v7  ;;  %742 = vmatpush3.bf16.xpose.msk.msra.mxu1 %vm914_vm2, %v846_v7 }
  0x32   :  { %711 = vmatprep.subr.bf16.mxu0 %v797_v3  ;;  %743 = vmatprep.subr.bf16.mxu1 %v797_v3 }
  0x39   :  { %714 = vmatpush3.bf16.xpose.msk.msra.mxu0 %vm914_vm2, %v662_v10  ;;  %746 = vmatpush3.bf16.xpose.msk.msra.mxu1 %vm914_vm2, %v662_v10 }
  0x3a   :  { %715 = vmatprep.subr.bf16.mxu0 %v797_v3  ;;  %747 = vmatprep.subr.bf16.mxu1 %v797_v3 }
  0x41   :  { %718 = vmatpush3.bf16.xpose.msk.msra.mxu0 %vm914_vm2, %v665_v13  ;;  %750 = vmatpush3.bf16.xpose.msk.msra.mxu1 %vm914_vm2, %v665_v13 }
  0x42   :  { %719 = vmatprep.subr.bf16.mxu0 %v797_v3  ;;  %751 = vmatprep.subr.bf16.mxu1 %v797_v3 }
  0x49   :  { %722 = vmatpush3.bf16.xpose.msk.msra.mxu0 %vm914_vm2, %v668_v16  ;;  %754 = vmatpush3.bf16.xpose.msk.msra.mxu1 %vm914_vm2, %v668_v16 }
  0x4a   :  { %723 = vmatprep.subr.bf16.mxu0 %v797_v3  ;;  %755 = vmatprep.subr.bf16.mxu1 %v797_v3 }
  0x51   :  { %726 = vmatpush3.bf16.xpose.msk.msra.mxu0 %vm914_vm2, %v671_v19  ;;  %758 = vmatpush3.bf16.xpose.msk.msra.mxu1 %vm914_vm2, %v671_v19 }
  0x52   :  { %727 = vmatprep.subr.bf16.mxu0 %v797_v3  ;;  %759 = vmatprep.subr.bf16.mxu1 %v797_v3 }
  0x59   :  { %730 = vmatpush3.bf16.xpose.msk.msra.mxu0 %vm914_vm2, %v674_v22  ;;  %762 = vmatpush3.bf16.xpose.msk.msra.mxu1 %vm914_vm2, %v674_v22 }
  0x5a   :  { %731 = vmatprep.subr.bf16.mxu0 %v797_v3  ;;  %763 = vmatprep.subr.bf16.mxu1 %v797_v3 }
  0x61   :  { %734 = vmatpush3.bf16.xpose.msk.msra.mxu0 %vm914_vm2, %v677_v25  ;;  %766 = vmatpush3.bf16.xpose.msk.msra.mxu1 %vm914_vm2, %v677_v25 }
  0xf6   :  { %v101_v29 = vpop.f32.mrb[0].mxu0  ;;  %v172_v30 = vpop.f32.mrb[0].mxu1 }
  0xf7   :  { %v176_v31 = vmul.f32 0.03125, %v101_v29  ;;  %v549_v32 = vpop.f32.mrb[1].mxu0  ;;  %v177_v33 = vmul.f32 0.03125, %v172_v30  ;;  %v584_v34 = vpop.f32.mrb[1].mxu1 }
  0xf9   :  { %v178_v35 = vmul.f32 %v176_v31, %v176_v31  ;;  %618 = vmatmul.mubr.msk.f32.vlgmr.msra.gmra.mrb[2].mxu0 %vm183_vm1, %v176_v31 }
  0xfb   :  { %v179_v36 = vsub.f32 %v177_v33, %v178_v35 }
  0xfd   :  { %v180_v37 = vmax.f32 %v179_v36, 0.0 }
  0xff   :  { %v181_v38 = vadd.f32 1e-05, %v180_v37 }
 0x101   :  { %771 = vrsqrt.f32 %v181_v38 }
 0x10b   :  { %v772_v39 = vpop.eup %771 }
 0x10c   :  { %653 = vmatmul.mubr.msk.f32.vlgmr.msra.gmra.mrb[2].mxu1 %vm183_vm1, %v772_v39 }
 0x1cc   :  { %v301_v40 = vpop.f32.mrb[2].mxu0 }
 0x1cd   :  { %v619_v41 = vpop.f32.mrb[3].mxu0  ;;  %v378_v42 = vsub.f32 %v901_v26, %v301_v40 }
 0x1df   :  { %v374_v43 = vpop.f32.mrb[2].mxu1 }
 0x1e0   :  { %v379_v45 = vmul.f32 %v378_v42, %v374_v43  ;;  %v654_v46 = vpop.f32.mrb[3].mxu1 }
 0x1e2   :  { %v387_v48 = vmul.f32 %v445_v44, %v379_v45 }
 0x1e4   :  { %v395_v49 = vadd.f32 %v446_v47, %v387_v48 }
 0x1e6   :  { %396 = vst [vmem:[#allocation2] sm:$0xff] %v395_v49 }
 0x1e7   :  { %784 = shalt.err (!%p781_p4)
}
 0x1e8   :  { %s785_s29 = scalar_lea.hbm %s993_s4, 128 }
 0x1e9   :  { %p786_p5 = scmp.ne.s32.totalorder %s993_s4, %s785_s29  ;;  %p789_p6 = scmp.lt.u32.totalorder %s785_s29, %s993_s4 }
 0x1eb   :  { %p791_p7 = pnand %p789_p6, %p786_p5 }
 0x1ed   :  { %794 = shalt.err (!%p791_p7)
}
 0x1ee   :  { %406 = dma.vmem_to_hbm [thread:$0]  %s404_s26, 128, %s993_s4, [#allocation3]  }
 0x1ef   :  { %795 = dma.done.wait [#allocation3], 128  }
 0x1f0   :  { %796 = vsyncadd [#allocation3], 4294967168 }
 0x1f1   :  { %410 = vsyncpa [#allocation3], 1 }

</bundles_post_ra>
